<compile_context>
chip_gen: v5e
topology: v5e:2x2
jax: 0.10.0
libtpu: 0.0.40
codegen_flags: <defaults>
</compile_context>

<pallas_src>
import numpy as np

import jax
import jax.numpy as jnp
from jax.experimental import pallas as pl
from jax.experimental.pallas import tpu as pltpu

COMPUTE_DTYPE = jnp.bfloat16      # MXU-native; f32 accumulation is kept.
LANE = 128


def _round_up(x, m):
    return -(-x // m) * m


# ---------------------------------------------------------------------------
# Parameters (raw, matching the PyTorch module's per-layer conv + BN).
# ---------------------------------------------------------------------------
def init_network_block_params(key, nb_layers, in_channels, out_channels,
                              batchnorm, bias, eps=1e-5):
    """Raw per-layer params: (w (3,3,Cin,Cout), bias (Cout,), bn_scale, bn_shift)."""
    params = []
    for i in range(int(nb_layers)):
        cin = in_channels if i == 0 else out_channels
        key, kw, kb, kg, kbe = jax.random.split(key, 5)
        fan_in = cin * 9
        w = jax.random.normal(kw, (3, 3, cin, out_channels),
                              jnp.float32) * (2.0 / fan_in) ** 0.5
        b = (0.01 * jax.random.normal(kb, (out_channels,), jnp.float32)
             if bias else jnp.zeros((out_channels,), jnp.float32))
        if batchnorm:
            gamma = 1.0 + 0.1 * jax.random.normal(kg, (out_channels,), jnp.float32)
            beta = 0.1 * jax.random.normal(kbe, (out_channels,), jnp.float32)
            running_mean = jnp.zeros((out_channels,), jnp.float32)
            running_var = jnp.ones((out_channels,), jnp.float32)
            scale = gamma / jnp.sqrt(running_var + eps)
            shift = beta - running_mean * scale
        else:
            scale = jnp.ones((out_channels,), jnp.float32)
            shift = jnp.zeros((out_channels,), jnp.float32)
        params.append((w, b, scale, shift))
    return params


# ---------------------------------------------------------------------------
# Host-side prep: fold conv + BN into banded GEMM operands (done once).
# ---------------------------------------------------------------------------
def _banded_weights(w, scale, stride, wo, col0, k_rows, n_cols):
    """(3, k_rows, n_cols): folds kw taps, channels, W-stride and BN scale.
    Columns outside the written band (W-halo + 128-lane pad) stay exactly 0."""
    _, _, cin, cout = w.shape
    wf = np.asarray(w, np.float32) * np.asarray(scale, np.float32)[None, None, None, :]
    bmat = np.zeros((3, k_rows, n_cols), np.float32)
    for kh in range(3):
        for kw_ in range(3):
            for ow in range(wo):
                r = (stride * ow + kw_) * cin
                c = col0 + ow * cout
                bmat[kh, r:r + cin, c:c + cout] += wf[kh, kw_]
    return bmat


def _folded_shift(bias, scale, shift, wo, col0, n_cols):
    """(1, n_cols): conv bias folded with BN scale/shift, tiled per output
    pixel.  Zero in W-halo / lane-pad columns so ReLU keeps them exactly zero
    (the next layer's halo invariant relies on this)."""
    cout = int(np.asarray(bias).shape[0])
    eff = (np.asarray(bias, np.float32) * np.asarray(scale, np.float32)
           + np.asarray(shift, np.float32))
    row = np.zeros((n_cols,), np.float32)
    for ow in range(wo):
        row[col0 + ow * cout: col0 + (ow + 1) * cout] = eff
    return row[None, :]


def prepare_network_block(params, in_channels, height, width, stride,
                          compute_dtype):
    """Static per-layer geometry + banded GEMM operands (batch-tile independent)."""
    nlayers = len(params)
    s0 = int(stride)
    hp = height + 2
    hp_pad = _round_up(hp, s0)                 # pad padded-H to a multiple of s0
    hpp = hp_pad // s0                         # rows per stride-parity plane
    wp = width + 2
    k0 = wp * in_channels                      # layer-0 input lane width

    cfg, operands = [], []
    h_in, w_in, c_in, k_in = height, width, in_channels, k0
    for i, (w, b, scale, shift) in enumerate(params):
        s = s0 if i == 0 else 1
        cout = int(w.shape[-1])
        assert int(w.shape[2]) == c_in, "channel chain mismatch"
        h_out = (h_in + 2 - 3) // s + 1
        w_out = (w_in + 2 - 3) // s + 1
        last = (i == nlayers - 1)
        col0 = 0 if last else cout                         # W-halo column offset
        width_cols = (w_out * cout) if last else ((w_out + 2) * cout)
        n_cols = _round_up(width_cols, LANE)               # lane-dense (review #3)
        bmat = _banded_weights(np.asarray(w), np.asarray(scale),
                               s, w_out, col0, k_in, n_cols)
        sh = _folded_shift(np.asarray(b), np.asarray(scale), np.asarray(shift),
                           w_out, col0, n_cols)
        cfg.append(dict(stride=s, cin=c_in, cout=cout, h_in=h_in, w_in=w_in,
                        h_out=h_out, w_out=w_out, k_rows=k_in, n_cols=n_cols,
                        last=last))
        operands.append((jnp.asarray(bmat, dtype=compute_dtype),   # bf16 weights
                         jnp.asarray(sh, dtype=jnp.float32)))      # f32 epilogue
        h_in, w_in, c_in, k_in = h_out, w_out, cout, n_cols
    geom = dict(s0=s0, hp=hp, hp_pad=hp_pad, hpp=hpp, wp=wp, k0=k0)
    return cfg, operands, geom


# ---------------------------------------------------------------------------
# Fused Pallas kernel: all layers of the block, activations resident in VMEM.
# ---------------------------------------------------------------------------
def _make_kernel(cfg, bt, spacings, m_rows):
    nlayers = len(cfg)

    def kernel(*refs):
        x_ref = refs[0]
        b_refs = [refs[1 + 2 * i] for i in range(nlayers)]
        sh_refs = [refs[2 + 2 * i] for i in range(nlayers)]
        o_ref = refs[1 + 2 * nlayers]
        slab_refs = list(refs[2 + 2 * nlayers:])

        for i, lc in enumerate(cfg):
            h, s = lc["h_out"], lc["stride"]
            sp_in, m = spacings[i], m_rows[i]
            last = (i == nlayers - 1)

            if i == 0:
                # Layer-0 input arrives as stride-parity planes
                # (1, s, bt*hpp, K0): tap kh reads plane kh%s, rows kh//s ...
                def rows(kh, _s=s, _m=m):
                    return x_ref[0, kh % _s, kh // _s: kh // _s + _m, :]
            else:
                # Stride-1 layers read the previous (halo-padded) VMEM slab.
                def rows(kh, _slab=slab_refs[i - 1], _m=m):
                    return _slab[kh: kh + _m, :]

            # 3 tap GEMMs on the MXU (bf16 operands, f32 accumulation).
            acc = jnp.dot(rows(0), b_refs[i][0],
                          preferred_element_type=jnp.float32)
            for kh in (1, 2):
                acc = acc + jnp.dot(rows(kh), b_refs[i][kh],
                                    preferred_element_type=jnp.float32)
            y = jnp.maximum(acc + sh_refs[i][...], 0.0)   # bias+BN folded; ReLU

            if not last:
                dst = slab_refs[i]
                sp_out = h + 2
                yd = y.astype(dst.dtype)
                if sp_in == sp_out:
                    # Contiguous store: "junk" rows (windows straddling two
                    # batch elements) land exactly on halo rows, zeroed below.
                    dst[1:1 + m, :] = yd
                else:
                    for bb in range(bt):                  # per-batch valid rows
                        dst[bb * sp_out + 1: bb * sp_out + 1 + h, :] = \
                            yd[bb * sp_in: bb * sp_in + h, :]
                zrow = jnp.zeros((1, dst.shape[1]), dst.dtype)
                for bb in range(bt):                      # (re-)zero H halos
                    dst[bb * sp_out: bb * sp_out + 1, :] = zrow
                    dst[bb * sp_out + h + 1: bb * sp_out + h + 2, :] = zrow
            else:
                yo = y.astype(o_ref.dtype)
                for bb in range(bt):                      # unmasked 128-lane vst
                    o_ref[0, bb, :, :] = yo[bb * sp_in: bb * sp_in + h, :]

    return kernel


def build_network_block_forward(params, in_channels, height, width, stride,
                                compute_dtype=COMPUTE_DTYPE, batch_tile=None):
    cfg, operands, geom = prepare_network_block(params, in_channels, height,
                                                width, stride, compute_dtype)
    nlayers = len(cfg)
    s0, hp, hp_pad, hpp, wp, k0 = (geom["s0"], geom["hp"], geom["hp_pad"],
                                   geom["hpp"], geom["wp"], geom["k0"])
    lf = cfg[-1]
    flat_operands = [a for pair in operands for a in pair]
    itemsize = np.dtype(compute_dtype).itemsize

    @jax.jit
    def forward(x_nchw):
        n = int(x_nchw.shape[0])
        h0 = cfg[0]["h_out"]
        # M-fattening (review #4): stack enough batch elements per grid step to
        # approach a 128-row MXU tile (the grid still shards over batch tiles).
        if batch_tile is not None:
            bt = max(1, min(int(batch_tile), n))
        else:
            bt = max(1, min(n, -(-128 // (h0 + 2))))
        n_tiles = -(-n // bt)
        n_pad = n_tiles * bt

        # Per-layer batch-stacking geometry: row spacing of each layer's
        # stacked input, and the stacked GEMM M (= (bt-1)*spacing + h_out).
        spacings, m_rows = [], []
        for i, lc in enumerate(cfg):
            sp = hpp if i == 0 else cfg[i - 1]["h_out"] + 2
            spacings.append(sp)
            m_rows.append((bt - 1) * sp + lc["h_out"])

        kernel = _make_kernel(cfg, bt, spacings, m_rows)

        in_specs = [pl.BlockSpec((1, s0, bt * hpp, k0), lambda t: (t, 0, 0, 0))]
        for bmat, sh in operands:
            # TODO(synk): pipeline_mode=pl.Buffered(1) would single-buffer these
            # constant operands (halves their VMEM) once channel counts grow.
            in_specs.append(pl.BlockSpec(tuple(bmat.shape), lambda t: (0, 0, 0)))
            in_specs.append(pl.BlockSpec(tuple(sh.shape), lambda t: (0, 0)))
        out_block = (1, bt, lf["h_out"], lf["n_cols"])
        out_specs = pl.BlockSpec(out_block, lambda t: (t, 0, 0, 0))

        scratch_shapes = [
            pltpu.VMEM((bt * (cfg[i]["h_out"] + 2), cfg[i]["n_cols"]),
                       compute_dtype)
            for i in range(nlayers - 1)
        ]

        # VMEM budget from actual sizes (review #6): double-buffered blocks +
        # resident scratch slabs + headroom, clamped under the chip's capacity.
        in_bytes = s0 * bt * hpp * k0 * itemsize
        w_bytes = sum(int(np.prod(b.shape)) * itemsize + int(np.prod(s.shape)) * 4
                      for b, s in operands)
        out_bytes = bt * lf["h_out"] * lf["n_cols"] * 4
        slab_bytes = sum(bt * (cfg[i]["h_out"] + 2) * cfg[i]["n_cols"] * itemsize
                         for i in range(nlayers - 1))
        need = 2 * (in_bytes + w_bytes + out_bytes) + slab_bytes
        vmem_limit = int(max(2 * need + (1 << 20), 16 << 20))
        try:
            cap = int(pltpu.get_tpu_info().vmem_capacity_bytes)
        except Exception:
            cap = 64 << 20                       # v7x-safe fallback
        vmem_limit = int(min(vmem_limit, cap - (2 << 20)))

        flops = n_tiles * sum(
            2 * 3 * m_rows[i] * cfg[i]["k_rows"] * cfg[i]["n_cols"]
            for i in range(nlayers))
        bytes_accessed = n_tiles * (in_bytes + out_bytes) + w_bytes
        cost = pl.CostEstimate(flops=int(flops), transcendentals=0,
                               bytes_accessed=int(bytes_accessed))

        # Single fused prep pass: pad H/W, split rows by stride parity, move to
        # the lane-dense (W*C) layout (absorbs NCHW->NHWC), stack the batch
        # tile along the row axis, and cast to the MXU compute dtype.
        # TODO(synk): when NetworkBlocks are chained, keep this lane-dense
        # layout between blocks instead of round-tripping through NCHW.
        xpad = jnp.pad(x_nchw, ((0, n_pad - n), (0, 0),
                                (1, 1 + hp_pad - hp), (1, 1)))
        xprep = (xpad.reshape(n_pad, in_channels, hpp, s0, wp)
                 .transpose(0, 3, 2, 4, 1)
                 .reshape(n_pad, s0, hpp, wp * in_channels)
                 .reshape(n_tiles, bt, s0, hpp, wp * in_channels)
                 .transpose(0, 2, 1, 3, 4)
                 .reshape(n_tiles, s0, bt * hpp, wp * in_channels)
                 .astype(compute_dtype))

        out = pl.pallas_call(
            kernel,
            out_shape=jax.ShapeDtypeStruct((n_tiles,) + out_block[1:],
                                           jnp.float32),
            grid=(n_tiles,),
            in_specs=in_specs,
            out_specs=out_specs,
            scratch_shapes=scratch_shapes,
            compiler_params=pltpu.CompilerParams(
                dimension_semantics=("parallel",),
                vmem_limit_bytes=vmem_limit),
            cost_estimate=cost,
        )(xprep, *flat_operands)

        # (n_tiles, bt, Ho, n_cols_pad) -> NCHW; drop batch pad + lane pad.
        out = out.reshape(n_pad, lf["h_out"], lf["n_cols"])
        out = out[:n, :, :lf["w_out"] * lf["cout"]]
        out = out.reshape(n, lf["h_out"], lf["w_out"], lf["cout"])
        return out.transpose(0, 3, 1, 2)

    return forward


# ---------------------------------------------------------------------------
# Pure-JAX reference (lax.conv), used only to validate the Pallas kernel.
# ---------------------------------------------------------------------------
def _reference_forward(x, params, stride, compute_dtype=None):
    """compute_dtype=None: full f32/HIGHEST reference.
    compute_dtype=bf16: mirrors the kernel's fold-then-cast numerics."""
    for i, (w, b, scale, shift) in enumerate(params):
        s = stride if i == 0 else 1
        wf = w * scale[None, None, None, :]            # fold BN scale into conv
        bias_eff = b * scale + shift                   # == (conv+b)*scale+shift
        if compute_dtype is None:
            lhs, rhs, prec = x, wf, jax.lax.Precision.HIGHEST
        else:
            lhs, rhs, prec = (x.astype(compute_dtype),
                              wf.astype(compute_dtype), None)
        y = jax.lax.conv_general_dilated(
            lhs, jnp.transpose(rhs, (3, 2, 0, 1)), (s, s), ((1, 1), (1, 1)),
            dimension_numbers=("NCHW", "OIHW", "NCHW"),
            precision=prec, preferred_element_type=jnp.float32)
        x = jnp.maximum(y + bias_eff.reshape(1, -1, 1, 1), 0.0)
    return x


if __name__ == "__main__":
    # NetworkBlock(nb_layers=2, in_channels=4, out_channels=8, block=ConvBNReLU,
    #              stride=2, batchnorm=True, bias=True)
    nb_layers, in_ch, out_ch, stride = 2, 4, 8, 2
    batchnorm, bias = True, True
    N, H, W = 2, 16, 16

    key = jax.random.PRNGKey(0)
    key, kx = jax.random.split(key)
    x = jax.random.normal(kx, (N, in_ch, H, W), jnp.float32)   # NCHW

    params = init_network_block_params(key, nb_layers, in_ch, out_ch,
                                       batchnorm, bias)
    forward = build_network_block_forward(params, in_ch, H, W, stride)

    out = jax.block_until_ready(forward(x))

    # Tight check vs a bf16-matched lax.conv reference (validates conv/stride/
    # padding/chaining semantics) + loose check vs the pure-f32 reference
    # (bounds the bf16 compute error).
    ref_bf16 = jax.block_until_ready(
        _reference_forward(x, params, stride, compute_dtype=COMPUTE_DTYPE))
    ref_f32 = jax.block_until_ready(_reference_forward(x, params, stride))

    assert out.shape == ref_f32.shape, (out.shape, ref_f32.shape)
    err_match = float(jnp.max(jnp.abs(out - ref_bf16)))
    err_f32 = float(jnp.max(jnp.abs(out - ref_f32)))
    assert jnp.allclose(out, ref_bf16, atol=2e-2, rtol=2e-2), err_match
    assert jnp.allclose(out, ref_f32, atol=1e-1, rtol=1e-1), err_f32

    print("KERNEL_OK")
</pallas_src>

<mosaic_0001>
module attributes {stable_mosaic.version = 11 : i64} {
  func.func @kernel(%arg0: i32, %arg1: memref<1x2x18x72xbf16, #tpu.memory_space<vmem>>, %arg2: memref<3x72x128xbf16, #tpu.memory_space<vmem>>, %arg3: memref<1x128xf32, #tpu.memory_space<vmem>>, %arg4: memref<3x128x128xbf16, #tpu.memory_space<vmem>>, %arg5: memref<1x128xf32, #tpu.memory_space<vmem>>, %arg6: memref<1x2x8x128xf32, #tpu.memory_space<vmem>>, %arg7: memref<20x128xbf16, #tpu.memory_space<vmem>>) attributes {dimension_semantics = [#tpu.dimension_semantics<parallel>], iteration_bounds = array<i64: 1>, scalar_prefetch = 0 : i64, scratch_operands = 1 : i64, tpu.core_type = #tpu.core_type<tc>, window_params = [{transform_indices = @transform_0, window_bounds = array<i64: 1, 2, 18, 72>}, {pipeline_mode = #tpu.pipeline_mode<synchronous>, transform_indices = @transform_1, window_bounds = array<i64: 3, 72, 128>}, {pipeline_mode = #tpu.pipeline_mode<synchronous>, transform_indices = @transform_2, window_bounds = array<i64: 1, 128>}, {pipeline_mode = #tpu.pipeline_mode<synchronous>, transform_indices = @transform_3, window_bounds = array<i64: 3, 128, 128>}, {pipeline_mode = #tpu.pipeline_mode<synchronous>, transform_indices = @transform_4, window_bounds = array<i64: 1, 128>}, {transform_indices = @transform_5, window_bounds = array<i64: 1, 2, 8, 128>}]} {
    %c0 = arith.constant 0 : index
    %c0_0 = arith.constant 0 : index
    %c0_1 = arith.constant 0 : index
    %c0_2 = arith.constant 0 : index
    %0 = vector.load %arg1[%c0, %c0_0, %c0_1, %c0_2] : memref<1x2x18x72xbf16, #tpu.memory_space<vmem>>, vector<1x1x17x72xbf16>
    %1 = vector.shape_cast %0 : vector<1x1x17x72xbf16> to vector<17x72xbf16>
    %c0_3 = arith.constant 0 : index
    %c0_4 = arith.constant 0 : index
    %c0_5 = arith.constant 0 : index
    %2 = vector.load %arg2[%c0_3, %c0_4, %c0_5] : memref<3x72x128xbf16, #tpu.memory_space<vmem>>, vector<1x72x128xbf16>
    %3 = vector.shape_cast %2 : vector<1x72x128xbf16> to vector<72x128xbf16>
    %cst = arith.constant dense<0.000000e+00> : vector<17x128xf32>
    %4 = tpu.matmul %1, %3, %cst {dimension_numbers = #tpu.dot_dimension_numbers<[1], [0], [0], [1], [0, 0, 1, 1], [], []>} : vector<17x72xbf16>, vector<72x128xbf16>, vector<17x128xf32> -> vector<17x128xf32>
    %c0_6 = arith.constant 0 : index
    %c1 = arith.constant 1 : index
    %c0_7 = arith.constant 0 : index
    %c0_8 = arith.constant 0 : index
    %5 = vector.load %arg1[%c0_6, %c1, %c0_7, %c0_8] : memref<1x2x18x72xbf16, #tpu.memory_space<vmem>>, vector<1x1x17x72xbf16>
    %6 = vector.shape_cast %5 : vector<1x1x17x72xbf16> to vector<17x72xbf16>
    %c1_9 = arith.constant 1 : index
    %c0_10 = arith.constant 0 : index
    %c0_11 = arith.constant 0 : index
    %7 = vector.load %arg2[%c1_9, %c0_10, %c0_11] : memref<3x72x128xbf16, #tpu.memory_space<vmem>>, vector<1x72x128xbf16>
    %8 = vector.shape_cast %7 : vector<1x72x128xbf16> to vector<72x128xbf16>
    %cst_12 = arith.constant dense<0.000000e+00> : vector<17x128xf32>
    %9 = tpu.matmul %6, %8, %cst_12 {dimension_numbers = #tpu.dot_dimension_numbers<[1], [0], [0], [1], [0, 0, 1, 1], [], []>} : vector<17x72xbf16>, vector<72x128xbf16>, vector<17x128xf32> -> vector<17x128xf32>
    %10 = arith.addf %4, %9 : vector<17x128xf32>
    %c0_13 = arith.constant 0 : index
    %c0_14 = arith.constant 0 : index
    %c1_15 = arith.constant 1 : index
    %c0_16 = arith.constant 0 : index
    %11 = vector.load %arg1[%c0_13, %c0_14, %c1_15, %c0_16] : memref<1x2x18x72xbf16, #tpu.memory_space<vmem>>, vector<1x1x17x72xbf16>
    %12 = vector.shape_cast %11 : vector<1x1x17x72xbf16> to vector<17x72xbf16>
    %c2 = arith.constant 2 : index
    %c0_17 = arith.constant 0 : index
    %c0_18 = arith.constant 0 : index
    %13 = vector.load %arg2[%c2, %c0_17, %c0_18] : memref<3x72x128xbf16, #tpu.memory_space<vmem>>, vector<1x72x128xbf16>
    %14 = vector.shape_cast %13 : vector<1x72x128xbf16> to vector<72x128xbf16>
    %cst_19 = arith.constant dense<0.000000e+00> : vector<17x128xf32>
    %15 = tpu.matmul %12, %14, %cst_19 {dimension_numbers = #tpu.dot_dimension_numbers<[1], [0], [0], [1], [0, 0, 1, 1], [], []>} : vector<17x72xbf16>, vector<72x128xbf16>, vector<17x128xf32> -> vector<17x128xf32>
    %16 = arith.addf %10, %15 : vector<17x128xf32>
    %c0_20 = arith.constant 0 : index
    %c0_21 = arith.constant 0 : index
    %17 = vector.load %arg3[%c0_20, %c0_21] : memref<1x128xf32, #tpu.memory_space<vmem>>, vector<1x128xf32>
    %18 = vector.broadcast %17 : vector<1x128xf32> to vector<17x128xf32>
    %19 = arith.addf %16, %18 : vector<17x128xf32>
    %cst_22 = arith.constant 0.000000e+00 : f32
    %20 = vector.broadcast %cst_22 : f32 to vector<17x128xf32>
    %21 = arith.maximumf %19, %20 : vector<17x128xf32>
    %22 = arith.truncf %21 : vector<17x128xf32> to vector<17x128xbf16>
    %23 = vector.extract_strided_slice %22 {offsets = [0, 0], sizes = [8, 128], strides = [1, 1]} : vector<17x128xbf16> to vector<8x128xbf16>
    %c1_23 = arith.constant 1 : index
    %c0_24 = arith.constant 0 : index
    %24 = vector.load %arg7[%c1_23, %c0_24] : memref<20x128xbf16, #tpu.memory_space<vmem>>, vector<8x128xbf16>
    tpu.vector_store %arg7[%c1_23, %c0_24], %23 {strides = array<i32>} : memref<20x128xbf16, #tpu.memory_space<vmem>>, vector<8x128xbf16>,
    %25 = vector.extract_strided_slice %22 {offsets = [9, 0], sizes = [8, 128], strides = [1, 1]} : vector<17x128xbf16> to vector<8x128xbf16>
    %c11 = arith.constant 11 : index
    %c0_25 = arith.constant 0 : index
    %26 = vector.load %arg7[%c11, %c0_25] : memref<20x128xbf16, #tpu.memory_space<vmem>>, vector<8x128xbf16>
    tpu.vector_store %arg7[%c11, %c0_25], %25 {strides = array<i32>} : memref<20x128xbf16, #tpu.memory_space<vmem>>, vector<8x128xbf16>,
    %cst_26 = arith.constant 0.000000e+00 : bf16
    %27 = vector.broadcast %cst_26 : bf16 to vector<1x128xbf16>
    %c0_27 = arith.constant 0 : index
    %c0_28 = arith.constant 0 : index
    %28 = vector.load %arg7[%c0_27, %c0_28] : memref<20x128xbf16, #tpu.memory_space<vmem>>, vector<1x128xbf16>
    tpu.vector_store %arg7[%c0_27, %c0_28], %27 {strides = array<i32>} : memref<20x128xbf16, #tpu.memory_space<vmem>>, vector<1x128xbf16>,
    %c9 = arith.constant 9 : index
    %c0_29 = arith.constant 0 : index
    %29 = vector.load %arg7[%c9, %c0_29] : memref<20x128xbf16, #tpu.memory_space<vmem>>, vector<1x128xbf16>
    tpu.vector_store %arg7[%c9, %c0_29], %27 {strides = array<i32>} : memref<20x128xbf16, #tpu.memory_space<vmem>>, vector<1x128xbf16>,
    %c10 = arith.constant 10 : index
    %c0_30 = arith.constant 0 : index
    %30 = vector.load %arg7[%c10, %c0_30] : memref<20x128xbf16, #tpu.memory_space<vmem>>, vector<1x128xbf16>
    tpu.vector_store %arg7[%c10, %c0_30], %27 {strides = array<i32>} : memref<20x128xbf16, #tpu.memory_space<vmem>>, vector<1x128xbf16>,
    %c19 = arith.constant 19 : index
    %c0_31 = arith.constant 0 : index
    %31 = vector.load %arg7[%c19, %c0_31] : memref<20x128xbf16, #tpu.memory_space<vmem>>, vector<1x128xbf16>
    tpu.vector_store %arg7[%c19, %c0_31], %27 {strides = array<i32>} : memref<20x128xbf16, #tpu.memory_space<vmem>>, vector<1x128xbf16>,
    %c0_32 = arith.constant 0 : index
    %c0_33 = arith.constant 0 : index
    %32 = vector.load %arg7[%c0_32, %c0_33] : memref<20x128xbf16, #tpu.memory_space<vmem>>, vector<18x128xbf16>
    %c0_34 = arith.constant 0 : index
    %c0_35 = arith.constant 0 : index
    %c0_36 = arith.constant 0 : index
    %33 = vector.load %arg4[%c0_34, %c0_35, %c0_36] : memref<3x128x128xbf16, #tpu.memory_space<vmem>>, vector<1x128x128xbf16>
    %34 = vector.shape_cast %33 : vector<1x128x128xbf16> to vector<128x128xbf16>
    %cst_37 = arith.constant dense<0.000000e+00> : vector<18x128xf32>
    %35 = tpu.matmul %32, %34, %cst_37 {dimension_numbers = #tpu.dot_dimension_numbers<[1], [0], [0], [1], [0, 0, 1, 1], [], []>} : vector<18x128xbf16>, vector<128x128xbf16>, vector<18x128xf32> -> vector<18x128xf32>
    %c1_38 = arith.constant 1 : index
    %c0_39 = arith.constant 0 : index
    %36 = vector.load %arg7[%c1_38, %c0_39] : memref<20x128xbf16, #tpu.memory_space<vmem>>, vector<18x128xbf16>
    %c1_40 = arith.constant 1 : index
    %c0_41 = arith.constant 0 : index
    %c0_42 = arith.constant 0 : index
    %37 = vector.load %arg4[%c1_40, %c0_41, %c0_42] : memref<3x128x128xbf16, #tpu.memory_space<vmem>>, vector<1x128x128xbf16>
    %38 = vector.shape_cast %37 : vector<1x128x128xbf16> to vector<128x128xbf16>
    %cst_43 = arith.constant dense<0.000000e+00> : vector<18x128xf32>
    %39 = tpu.matmul %36, %38, %cst_43 {dimension_numbers = #tpu.dot_dimension_numbers<[1], [0], [0], [1], [0, 0, 1, 1], [], []>} : vector<18x128xbf16>, vector<128x128xbf16>, vector<18x128xf32> -> vector<18x128xf32>
    %40 = arith.addf %35, %39 : vector<18x128xf32>
    %c2_44 = arith.constant 2 : index
    %c0_45 = arith.constant 0 : index
    %41 = vector.load %arg7[%c2_44, %c0_45] : memref<20x128xbf16, #tpu.memory_space<vmem>>, vector<18x128xbf16>
    %c2_46 = arith.constant 2 : index
    %c0_47 = arith.constant 0 : index
    %c0_48 = arith.constant 0 : index
    %42 = vector.load %arg4[%c2_46, %c0_47, %c0_48] : memref<3x128x128xbf16, #tpu.memory_space<vmem>>, vector<1x128x128xbf16>
    %43 = vector.shape_cast %42 : vector<1x128x128xbf16> to vector<128x128xbf16>
    %cst_49 = arith.constant dense<0.000000e+00> : vector<18x128xf32>
    %44 = tpu.matmul %41, %43, %cst_49 {dimension_numbers = #tpu.dot_dimension_numbers<[1], [0], [0], [1], [0, 0, 1, 1], [], []>} : vector<18x128xbf16>, vector<128x128xbf16>, vector<18x128xf32> -> vector<18x128xf32>
    %45 = arith.addf %40, %44 : vector<18x128xf32>
    %c0_50 = arith.constant 0 : index
    %c0_51 = arith.constant 0 : index
    %46 = vector.load %arg5[%c0_50, %c0_51] : memref<1x128xf32, #tpu.memory_space<vmem>>, vector<1x128xf32>
    %47 = vector.broadcast %46 : vector<1x128xf32> to vector<18x128xf32>
    %48 = arith.addf %45, %47 : vector<18x128xf32>
    %cst_52 = arith.constant 0.000000e+00 : f32
    %49 = vector.broadcast %cst_52 : f32 to vector<18x128xf32>
    %50 = arith.maximumf %48, %49 : vector<18x128xf32>
    %51 = vector.extract_strided_slice %50 {offsets = [0, 0], sizes = [8, 128], strides = [1, 1]} : vector<18x128xf32> to vector<8x128xf32>
    %c0_53 = arith.constant 0 : index
    %c0_54 = arith.constant 0 : index
    %c0_55 = arith.constant 0 : index
    %c0_56 = arith.constant 0 : index
    %52 = vector.load %arg6[%c0_53, %c0_54, %c0_55, %c0_56] : memref<1x2x8x128xf32, #tpu.memory_space<vmem>>, vector<1x1x8x128xf32>
    %53 = vector.shape_cast %52 : vector<1x1x8x128xf32> to vector<8x128xf32>
    %54 = vector.shape_cast %51 : vector<8x128xf32> to vector<1x1x8x128xf32>
    tpu.vector_store %arg6[%c0_53, %c0_54, %c0_55, %c0_56], %54 {strides = array<i32>} : memref<1x2x8x128xf32, #tpu.memory_space<vmem>>, vector<1x1x8x128xf32>,
    %55 = vector.extract_strided_slice %50 {offsets = [10, 0], sizes = [8, 128], strides = [1, 1]} : vector<18x128xf32> to vector<8x128xf32>
    %c0_57 = arith.constant 0 : index
    %c1_58 = arith.constant 1 : index
    %c0_59 = arith.constant 0 : index
    %c0_60 = arith.constant 0 : index
    %56 = vector.load %arg6[%c0_57, %c1_58, %c0_59, %c0_60] : memref<1x2x8x128xf32, #tpu.memory_space<vmem>>, vector<1x1x8x128xf32>
    %57 = vector.shape_cast %56 : vector<1x1x8x128xf32> to vector<8x128xf32>
    %58 = vector.shape_cast %55 : vector<8x128xf32> to vector<1x1x8x128xf32>
    tpu.vector_store %arg6[%c0_57, %c1_58, %c0_59, %c0_60], %58 {strides = array<i32>} : memref<1x2x8x128xf32, #tpu.memory_space<vmem>>, vector<1x1x8x128xf32>,
    return
  }
  func.func @transform_0(%arg0: i32) -> (i32, i32, i32, i32) {
    %c0_i32 = arith.constant 0 : i32
    %c0_i32_0 = arith.constant 0 : i32
    %c0_i32_1 = arith.constant 0 : i32
    %c0_i32_2 = arith.constant 0 : i32
    return %arg0, %c0_i32, %c0_i32_0, %c0_i32_1 : i32, i32, i32, i32
  }
  func.func @transform_1(%arg0: i32) -> (i32, i32, i32) {
    %c0_i32 = arith.constant 0 : i32
    %c0_i32_0 = arith.constant 0 : i32
    %c0_i32_1 = arith.constant 0 : i32
    %c0_i32_2 = arith.constant 0 : i32
    return %c0_i32, %c0_i32_0, %c0_i32_1 : i32, i32, i32
  }
  func.func @transform_2(%arg0: i32) -> (i32, i32) {
    %c0_i32 = arith.constant 0 : i32
    %c0_i32_0 = arith.constant 0 : i32
    %c0_i32_1 = arith.constant 0 : i32
    return %c0_i32, %c0_i32_0 : i32, i32
  }
  func.func @transform_3(%arg0: i32) -> (i32, i32, i32) {
    %c0_i32 = arith.constant 0 : i32
    %c0_i32_0 = arith.constant 0 : i32
    %c0_i32_1 = arith.constant 0 : i32
    %c0_i32_2 = arith.constant 0 : i32
    return %c0_i32, %c0_i32_0, %c0_i32_1 : i32, i32, i32
  }
  func.func @transform_4(%arg0: i32) -> (i32, i32) {
    %c0_i32 = arith.constant 0 : i32
    %c0_i32_0 = arith.constant 0 : i32
    %c0_i32_1 = arith.constant 0 : i32
    return %c0_i32, %c0_i32_0 : i32, i32
  }
  func.func @transform_5(%arg0: i32) -> (i32, i32, i32, i32) {
    %c0_i32 = arith.constant 0 : i32
    %c0_i32_0 = arith.constant 0 : i32
    %c0_i32_1 = arith.constant 0 : i32
    %c0_i32_2 = arith.constant 0 : i32
    return %arg0, %c0_i32, %c0_i32_0, %c0_i32_1 : i32, i32, i32, i32
  }
}

</mosaic_0001>

<bundles_post_ra>
// kernel: forward.1
= control target key start
LH: loop header
LB: loop body
LE: loop exit
PB: predicated region body
PF: predicated region fallthrough
CT: control target
= control target key end

     0   :  { %vm89_vm0 = vcmask 1043456   ;;  %vm183_vm1 = vsmask.f32 7424  ;;  %vm82_vm2 = vcmask 588800   ;;  %vm277_vm3 = vsmask.f32 7938  ;;  %s1170_s1 = inlined_call_operand.vmem [shape: bf16[3,72,128], index: 1, kind: input, shape index: {}]   ;;  %s1171_s0 = inlined_call_operand.vmem [shape: bf16[1,2,18,72], index: 0, kind: input, shape index: {}]   ;;  %s1172_s2 = inlined_call_operand.vmem [shape: f32[1,128], index: 2, kind: input, shape index: {}]   ;;  %s1173_s3 = inlined_call_operand.vmem [shape: bf16[3,128,128], index: 3, kind: input, shape index: {}]   ;;  %s1174_s4 = inlined_call_operand.vmem [shape: f32[1,128], index: 4, kind: input, shape index: {}]   ;;  %s1175_s5 = inlined_call_operand.vmem [shape: f32[1,2,8,128], index: 5, kind: output, shape index: {}]  }
   0x1   :  { %v650_v0 = vld [vmem:[%s1170_s1 + $0x44] sm:$0xf]  ;;  %v32_v1 = vld [vmem:[%s1170_s1 + $0x20] sm:$0xf]  ;;  %v703_v4 = vld [vmem:[%s1170_s1 + $0x68] sm:$0xf] }
   0x2   :  { %v72_v2 = vunpack.c.l.b16 %v650_v0  ;;  %v136_v3 = vunpack.c.l.b16 %v32_v1  ;;  %v213_v5 = vunpack.c.l.b16 %v703_v4  ;;  %v861_v12 = vld [vmem:[%s1170_s1 + $0x3c] sm:$0xff]  ;;  %v23_v14 = vld [vmem:[%s1171_s0 + $0x8] sm:$0x1]  ;;  %v860_v18 = vld [vmem:[%s1170_s1 + $0x34] sm:$0xff]  ;;  %vm282_vm4 = vcmask 1040384  }
   0x3   :  { %v856_v13 = vld [vmem:[%s1170_s1 + $0x18] sm:$0xff]  ;;  %v865_v15 = vld [vmem:[%s1170_s1 + $0x60] sm:$0xff]  ;;  %v116_v17 = vunpack.c.l.b16 %v23_v14  ;;  %v855_v19 = vld [vmem:[%s1170_s1 + $0x10] sm:$0xff]  ;;  %vm283_vm5 = vsmask.f32 256  ;;  %vm298_vm8 = vcmask 1043457  }
   0x4   :  { %v77_v6 = vpack.c.b16 %v72_v2, %v72_v2  ;;  %v141_v7 = vpack.c.b16 %v136_v3, %v136_v3  ;;  %v218_v8 = vpack.c.b16 %v213_v5, %v213_v5  ;;  %v852_v16 = vld [vmem:[%s1171_s0] sm:$0xff]  ;;  %v864_v20 = vld [vmem:[%s1170_s1 + $0x58] sm:$0xff]  ;;  %v859_v23 = vld [vmem:[%s1170_s1 + $0x2c] sm:$0xff]  ;;  %vm299_vm9 = vsmask.f32 7942 }
   0x5   :  { %v186_v21 = vshll.u32 %v852_v16, 16  ;;  %v118_v22 = vpack.c.b16 %v116_v17, %v116_v17  ;;  %v854_v24 = vld [vmem:[%s1170_s1 + $0x8] sm:$0xff]  ;;  %v863_v25 = vld [vmem:[%s1170_s1 + $0x50] sm:$0xff]  ;;  %v184_v26 = vshrl.u32 %v852_v16, 16  ;;  %v853_v30 = vld [vmem:[%s1170_s1] sm:$0xff]  ;;  %vm317_vm12 = vcmask 1041409  }
   0x6   :  { %v91_v9 = vsel %vm89_vm0, %v77_v6, 0  ;;  %v153_v10 = vsel %vm89_vm0, %v141_v7, 0  ;;  %v230_v11 = vsel %vm89_vm0, %v218_v8, 0  ;;  %v858_v29 = vld [vmem:[%s1170_s1 + $0x24] sm:$0xff]  ;;  %v857_v34 = vld [vmem:[%s1171_s0 + $0xc] sm:$0xff]  ;;  %v873_v40 = vld [vmem:[%s1173_s3 + $0x38] sm:$0xff] }
   0x7   :  { %96 = vmatpush.bf16.msra.mxu0 %v91_v9  ;;  %158 = vmatpush.bf16.msra.mxu1 %v153_v10  ;;  %v188_v27 = vrot.slane %v186_v21, 1  ;;  %v190_v28 = vshll.u32 %v118_v22, 16  ;;  %v862_v31 = vld [vmem:[%s1170_s1 + $0x48] sm:$0xff]  ;;  %v641_v36 = vld [vmem:[%s1171_s0 + $0x14] sm:$0x1]  ;;  %v194_v39 = vshrl.u32 %v118_v22, 16  ;;  %vm1091_vm6 = vmand %vm89_vm0, %vm277_vm3 }
   0x8   :  { %235 = vmatpush.bf16.msra.mxu2 %v230_v11  ;;  %v52_v37 = vunpack.c.l.b16 %v641_v36  ;;  %v872_v41 = vld [vmem:[%s1173_s3 + $0x30] sm:$0xff]  ;;  %v871_v42 = vld [vmem:[%s1173_s3 + $0x28] sm:$0xff]  ;;  %v870_v43 = vld [vmem:[%s1173_s3 + $0x20] sm:$0xff]  ;;  %vm305_vm11 = vsmask.f32 1280  ;;  %vm290_vm13 = vcmask 1044484  }
   0x9   :  { %v189_v32 = vor.u32 %v188_v27, %v184_v26  ;;  %v192_v33 = vrot.slane %v190_v28, 1  ;;  %v869_v44 = vld [vmem:[%s1173_s3 + $0x18] sm:$0xff]  ;;  %v868_v49 = vld [vmem:[%s1173_s3 + $0x10] sm:$0xff]  ;;  %v867_v53 = vld [vmem:[%s1173_s3 + $0x8] sm:$0xff]  ;;  %vm304_vm15 = vcmask 1041408  }
   0xa   :  { %v54_v38 = vpack.c.b16 %v52_v37, %v52_v37  ;;  %v1024_v45 = vld [vmem:[%s1173_s3 + $0xb8] sm:$0xff]  ;;  %v1036_v50 = vld [vmem:[%s1173_s3 + $0xb0] sm:$0xff]  ;;  %v1048_v54 = vld [vmem:[%s1173_s3 + $0xa8] sm:$0xff] }
   0xb   :  { %97 = vmatpush.bf16.msra.mxu0 %v861_v12  ;;  %159 = vmatpush.bf16.msra.mxu1 %v856_v13  ;;  %v193_v35 = vsel %vm183_vm1, %v189_v32, %v192_v33  ;;  %v881_v46 = vld [vmem:[%s1173_s3 + $0x78] sm:$0xff]  ;;  %v880_v51 = vld [vmem:[%s1173_s3 + $0x70] sm:$0xff]  ;;  %v1053_v55 = vld [vmem:[%s1172_s2] ss:$0 sm:$0xff] }
   0xc   :  { %236 = vmatpush.bf16.msra.mxu2 %v865_v15  ;;  %436 = vmatpush.bf16.msra.mxu3 %v881_v46  ;;  %v879_v56 = vld [vmem:[%s1173_s3 + $0x68] sm:$0xff]  ;;  %v866_v61 = vld [vmem:[%s1173_s3] sm:$0xff]  ;;  %v1075_v2 = vld [vmem:[%s1173_s3 + $0x98] sm:$0xff] }
   0xd   :  { %v1065_v62 = vld [vmem:[%s1173_s3 + $0xa0] sm:$0xff]  ;;  %v877_v5 = vld [vmem:[%s1173_s3 + $0x58] sm:$0xff]  ;;  %v1084_v11 = vld [vmem:[%s1173_s3 + $0x90] sm:$0xff] }
   0xe   :  { %v878_v0 = vld [vmem:[%s1173_s3 + $0x60] sm:$0xff]  ;;  %v876_v12 = vld [vmem:[%s1173_s3 + $0x50] sm:$0xff]  ;;  %vm1104_vm7 = vmand %vm282_vm4, %vm283_vm5  ;;  %vm546_vm5 = vcmask 1046528  }
   0xf   :  { %98 = vmatpush.bf16.msra.mxu0 %v860_v18  ;;  %160 = vmatpush.bf16.msra.mxu1 %v855_v19  ;;  %v1100_v18 = vld [vmem:[%s1173_s3 + $0x88] sm:$0xff]  ;;  %vm300_vm10 = vmand %vm298_vm8, %vm299_vm9  ;;  %v874_v36 = vld [vmem:[%s1173_s3 + $0x40] sm:$0xff] }
  0x10   :  { %237 = vmatpush.bf16.msra.mxu2 %v864_v20  ;;  %437 = vmatpush.bf16.msra.mxu3 %v880_v51  ;;  %v285_v20 = vld [vmem:[#allocation2 + $0x4] sm:$0x1]  ;;  %vm1129_vm14 = vmand %vm282_vm4, %vm277_vm3 }
  0x11   :  { %vm1136_vm0 = vmand %vm317_vm12, %vm305_vm11 }
  0x12   :  { %vm306_vm3 = vmand %vm304_vm15, %vm305_vm11 }
  0x13   :  { %99 = vmatpush.bf16.msra.mxu0 %v859_v23  ;;  %161 = vmatpush.bf16.msra.mxu1 %v854_v24 }
  0x14   :  { %238 = vmatpush.bf16.msra.mxu2 %v863_v25  ;;  %438 = vmatpush.bf16.msra.mxu3 %v879_v56  ;;  %v875_v25 = vld [vmem:[%s1173_s3 + $0x48] sm:$0xff] }
  0x17   :  { %100 = vmatpush.bf16.msra.mxu0 %v858_v29  ;;  %162 = vmatpush.bf16.msra.mxu1 %v853_v30  ;;  %v1119_v29 = vld [vmem:[%s1173_s3 + $0x80] sm:$0xff] }
  0x18   :  { %239 = vmatpush.bf16.msra.mxu2 %v862_v31  ;;  %439 = vmatpush.bf16.msra.mxu3 %v878_v0  ;;  %v301_v30 = vld [vmem:[#allocation2 + $0x4] sm:$0xe] }
  0x1a   :  { %671 = vmatmul.msk.bf16.vlgmr.msra.gmra.mxu0 %vm82_vm2, %v857_v34  ;;  %693 = vmatmul.msk.bf16.vlgmr.msra.gmra.mxu1 %vm82_vm2, %v852_v16  ;;  %v279_v16 = vld [vmem:[#allocation2] sm:$0xf] }
  0x1b   :  { %720 = vmatmul.msk.bf16.vlgmr.msra.gmra.mxu2 %vm82_vm2, %v193_v35  ;;  %507 = vmatpush.bf16.msrb.mxu0 %v873_v40 }
  0x1c   :  { %897 = vmatpush.bf16.msrb.mxu2 %v873_v40  ;;  %600 = vmatpush.bf16.msrb.mxu1 %v1024_v45 }
  0x1d   :  { %440 = vmatpush.bf16.msra.mxu3 %v877_v5 }
  0x1f   :  { %508 = vmatpush.bf16.msrb.mxu0 %v872_v41 }
  0x20   :  { %898 = vmatpush.bf16.msrb.mxu2 %v872_v41  ;;  %601 = vmatpush.bf16.msrb.mxu1 %v1036_v50 }
  0x21   :  { %441 = vmatpush.bf16.msra.mxu3 %v876_v12 }
  0x23   :  { %509 = vmatpush.bf16.msrb.mxu0 %v871_v42 }
  0x24   :  { %899 = vmatpush.bf16.msrb.mxu2 %v871_v42  ;;  %602 = vmatpush.bf16.msrb.mxu1 %v1048_v54 }
  0x25   :  { %442 = vmatpush.bf16.msra.mxu3 %v875_v25 }
  0x27   :  { %510 = vmatpush.bf16.msrb.mxu0 %v870_v43 }
  0x28   :  { %900 = vmatpush.bf16.msrb.mxu2 %v870_v43  ;;  %603 = vmatpush.bf16.msrb.mxu1 %v1065_v62 }
  0x29   :  { %443 = vmatpush.bf16.msra.mxu3 %v874_v36 }
  0x2a   :  { %672 = vmatmul.msk.bf16.gmra.mxu0 %vm82_vm2, %v54_v38  ;;  %694 = vmatmul.msk.bf16.gmra.mxu1 %vm82_vm2, %v118_v22 }
  0x2b   :  { %721 = vmatmul.msk.bf16.gmra.mxu2 %vm82_vm2, %v194_v39  ;;  %511 = vmatpush.bf16.msrb.mxu0 %v869_v44  ;;  %vm291_vm2 = vmor %vm282_vm4, %vm290_vm13 }
  0x2c   :  { %901 = vmatpush.bf16.msrb.mxu2 %v869_v44  ;;  %604 = vmatpush.bf16.msrb.mxu1 %v1075_v2  ;;  %vm322_vm4 = vmand %vm317_vm12, %vm299_vm9 }
  0x2d   :  { %905 = vmatpush.bf16.msrb.mxu3 %v1024_v45 }
  0x2f   :  { %512 = vmatpush.bf16.msrb.mxu0 %v868_v49 }
  0x30   :  { %902 = vmatpush.bf16.msrb.mxu2 %v868_v49  ;;  %605 = vmatpush.bf16.msrb.mxu1 %v1084_v11 }
  0x31   :  { %906 = vmatpush.bf16.msrb.mxu3 %v1036_v50 }
  0x33   :  { %513 = vmatpush.bf16.msrb.mxu0 %v867_v53 }
  0x34   :  { %903 = vmatpush.bf16.msrb.mxu2 %v867_v53  ;;  %606 = vmatpush.bf16.msrb.mxu1 %v1100_v18 }
  0x35   :  { %907 = vmatpush.bf16.msrb.mxu3 %v1048_v54 }
  0x37   :  { %514 = vmatpush.bf16.msrb.mxu0 %v866_v61 }
  0x38   :  { %904 = vmatpush.bf16.msrb.mxu2 %v866_v61  ;;  %607 = vmatpush.bf16.msrb.mxu1 %v1119_v29 }
  0x39   :  { %908 = vmatpush.bf16.msrb.mxu3 %v1065_v62 }
  0x3d   :  { %909 = vmatpush.bf16.msrb.mxu3 %v1075_v2 }
  0x41   :  { %910 = vmatpush.bf16.msrb.mxu3 %v1084_v11 }
  0x45   :  { %911 = vmatpush.bf16.msrb.mxu3 %v1100_v18 }
  0x49   :  { %912 = vmatpush.bf16.msrb.mxu3 %v1119_v29 }
  0x97   :  { %v102_v47 = vpop.f32.mrf.mxu0  ;;  %v164_v48 = vpop.f32.mrf.mxu1 }
  0x98   :  { %v165_v52 = vadd.f32 %v164_v48, %v102_v47  ;;  %v307_v47 = vld [vmem:[#allocation2 + $0x8] sm:$0x3] }
  0x9e   :  { %v241_v57 = vpop.f32.mrf.mxu2 }
  0x9f   :  { %v250_v58 = vadd.f32 %v241_v57, %v165_v52  ;;  %v104_v59 = vpop.f32.mrf.mxu0  ;;  %v166_v60 = vpop.f32.mrf.mxu1 }
  0xa0   :  { %v167_v4 = vadd.f32 %v166_v60, %v104_v59 }
  0xa1   :  { %v257_v63 = vadd.f32 %v1053_v55, %v250_v58 }
  0xa3   :  { %v260_v1 = vmax.f32 %v257_v63, 0.0 }
  0xa5   :  { %v263_v3 = vpack.c.bf16 %v260_v1, %v260_v1 }
  0xa6   :  { %v243_v6 = vpop.f32.mrf.mxu2 }
  0xa7   :  { %v267_v7 = vshrl.u32 %v263_v3, 16  ;;  %v251_v8 = vadd.f32 %v243_v6, %v167_v4  ;;  %v107_v9 = vpop.f32.mrf.mxu0  ;;  %v169_v10 = vpop.f32.mrf.mxu1  ;;  %v270_v15 = vshll.u32 %v263_v3, 16 }
  0xa8   :  { %v170_v24 = vadd.f32 %v169_v10, %v107_v9 }
  0xa9   :  { %v269_v14 = vrot.slane %v267_v7, 7  ;;  %v258_v17 = vadd.f32 %v1053_v55, %v251_v8 }
  0xab   :  { %v272_v21 = vor.u32 %v270_v15, %v269_v14  ;;  %v273_v22 = vrot.slane %v269_v14, 4  ;;  %v261_v23 = vmax.f32 %v258_v17, 0.0 }
  0xad   :  { %v280_v26 = vsel %vm1091_vm6, %v272_v21, %v279_v16  ;;  %v286_v27 = vsel %vm1104_vm7, %v273_v22, %v285_v20  ;;  %v264_v28 = vpack.c.bf16 %v261_v23, %v261_v23  ;;  %v914_v21 = vld [vmem:[%s1174_s4] ss:$0 sm:$0xff] }
  0xae   :  { %281 = vst [vmem:[#allocation2] sm:$0xf] %v280_v26  ;;  %v246_v31 = vpop.f32.mrf.mxu2 }
  0xaf   :  { %287 = vst [vmem:[#allocation2 + $0x4] sm:$0x1] %v286_v27  ;;  %v292_v32 = vrot.slane %v264_v28, 7  ;;  %v252_v33 = vadd.f32 %v246_v31, %v170_v24  ;;  %v109_v34 = vpop.f32.mrf.mxu0  ;;  %v171_v35 = vpop.f32.mrf.mxu1 }
  0xb1   :  { %v302_v37 = vsel %vm300_vm10, %v292_v32, %v301_v30  ;;  %v259_v38 = vadd.f32 %v1053_v55, %v252_v33  ;;  %v293_v49 = vrot.slane %v292_v32, 4 }
  0xb2   :  { %303 = vst [vmem:[#allocation2 + $0x4] sm:$0xe] %v302_v37 }
  0xb3   :  { %v262_v39 = vmax.f32 %v259_v38, 0.0 }
  0xb5   :  { %v310_v41 = vld [vmem:[#allocation2] sm:$0x1]  ;;  %v265_v43 = vpack.c.bf16 %v262_v39, %v262_v39  ;;  %v895_v62 = vld [vmem:[#allocation2] sm:$0xe] }
  0xb6   :  { %v311_v44 = vsel %vm1104_vm7, 0, %v310_v41  ;;  %v314_v46 = vld [vmem:[#allocation2 + $0x4] sm:$0x1]  ;;  %v248_v48 = vpop.f32.mrf.mxu2 }
  0xb7   :  { %312 = vst [vmem:[#allocation2] sm:$0x1] %v311_v44  ;;  %v315_v45 = vsel %vm1129_vm14, 0, %v314_v46  ;;  %v294_v51 = vrot.slane %v265_v43, 7 }
  0xb8   :  { %316 = vst [vmem:[#allocation2 + $0x4] sm:$0x1] %v315_v45 }
  0xb9   :  { %v319_v52 = vld [vmem:[#allocation2 + $0x4] sm:$0x2]  ;;  %v295_v53 = vsel %vm291_vm2, %v293_v49, %v294_v51 }
  0xba   :  { %v320_v55 = vsel %vm1136_vm0, 0, %v319_v52  ;;  %v308_v56 = vsel %vm306_vm3, %v295_v53, %v307_v47 }
  0xbb   :  { %321 = vst [vmem:[#allocation2 + $0x4] sm:$0x2] %v320_v55 }
  0xbc   :  { %309 = vst [vmem:[#allocation2 + $0x8] sm:$0x3] %v308_v56 }
  0xc2   :  { %v891_v57 = vld [vmem:[#allocation2] sm:$0xff]  }
  0xc3   :  { %v323_v58 = vld [vmem:[#allocation2 + $0x8] sm:$0x2]  ;;  %515 = vmatmul.bf16.vlgmr.msrb.gmra.mxu0 %v891_v57  ;;  %v328_v59 = vld [vmem:[#allocation2 + $0x8] sm:$0x1]  ;;  %v894_v63 = vld [vmem:[#allocation2] sm:$0xf0] }
  0xc4   :  { %v324_v50 = vsel %vm322_vm4, 0, %v323_v58  ;;  %v455_v60 = vunpack.c.l.b16 %v328_v59  ;;  %v374_v54 = vshll.u32 %v891_v57, 16  ;;  %v896_v3 = vor.u32 %v895_v62, %v894_v63 }
  0xc5   :  { %325 = vst [vmem:[#allocation2 + $0x8] sm:$0x2] %v324_v50  ;;  %v372_v6 = vshrl.u32 %v891_v57, 16 }
  0xc6   :  { %v456_v61 = vpack.c.b16 %v455_v60, %v455_v60  ;;  %v376_v4 = vrot.slane %v374_v54, 1  ;;  %v547_v2 = vrot.slane %v896_v3, 1 }
  0xc8   :  { %520 = vmatmul.bf16.vlgmr.msrb.gmra.mxu2 %v456_v61  ;;  %v377_v10 = vor.u32 %v376_v4, %v372_v6 }
  0xcc   :  { %v345_v0 = vld [vmem:[#allocation2 + $0x8] sm:$0x3] }
  0xcd   :  { %v368_v1 = vunpack.c.l.b16 %v345_v0 }
  0xcf   :  { %v370_v5 = vpack.c.b16 %v368_v1, %v368_v1 }
  0xd1   :  { %v548_v7 = vrot.slane %v370_v5, 1  ;;  %v379_v8 = vshll.u32 %v370_v5, 16  ;;  %v383_v13 = vshrl.u32 %v370_v5, 16 }
  0xd3   :  { %v549_v9 = vsel %vm546_vm5, %v547_v2, %v548_v7  ;;  %v381_v11 = vrot.slane %v379_v8, 1 }
  0xd4   :  { %608 = vmatmul.bf16.vlgmr.msrb.gmra.mxu1 %v549_v9 }
  0xd5   :  { %v382_v12 = vsel %vm183_vm1, %v377_v10, %v381_v11  ;;  %v385_v14 = vor.u32 %v383_v13, %v381_v11 }
  0xd6   :  { %444 = vmatmul.bf16.vlgmr.msra.gmra.mxu3 %v382_v12 }
  0xe6   :  { %449 = vmatmul.bf16.gmra.mxu3 %v385_v14 }
  0xf6   :  { %613 = vmatmul.bf16.vlgmr.msrb.gmra.mxu3 %v548_v7 }
 0x140   :  { %v516_v17 = vpop.f32.mrf.mxu0 }
 0x148   :  { %v518_v25 = vpop.f32.mrf.mxu0 }
 0x14b   :  { %v521_v15 = vpop.f32.mrf.mxu2 }
 0x151   :  { %v609_v18 = vpop.f32.mrf.mxu1 }
 0x153   :  { %v523_v16 = vpop.f32.mrf.mxu2 }
 0x159   :  { %v445_v19 = vpop.f32.mrf.mxu3  ;;  %v611_v28 = vpop.f32.mrf.mxu1 }
 0x15a   :  { %v517_v20 = vadd.f32 %v516_v17, %v445_v19 }
 0x15c   :  { %v618_v22 = vadd.f32 %v609_v18, %v517_v20 }
 0x15e   :  { %v625_v23 = vadd.f32 %v914_v21, %v618_v22 }
 0x160   :  { %v628_v24 = vmax.f32 %v625_v23, 0.0 }
 0x161   :  { %v447_v26 = vpop.f32.mrf.mxu3 }
 0x162   :  { %631 = vst [vmem:[%s1175_s5] sm:$0xff] %v628_v24  ;;  %v519_v27 = vadd.f32 %v518_v25, %v447_v26 }
 0x164   :  { %v619_v29 = vadd.f32 %v611_v28, %v519_v27 }
 0x166   :  { %v626_v30 = vadd.f32 %v914_v21, %v619_v29 }
 0x168   :  { %v629_v31 = vmax.f32 %v626_v30, 0.0 }
 0x169   :  { %v450_v32 = vpop.f32.mrf.mxu3 }
 0x16a   :  { %850 = vst [vmem:[%s1175_s5 + $0x6] sm:$0xfc] %v629_v31  ;;  %v522_v34 = vadd.f32 %v521_v15, %v450_v32 }
 0x171   :  { %v452_v33 = vpop.f32.mrf.mxu3 }
 0x179   :  { %v614_v35 = vpop.f32.mrf.mxu3 }
 0x17a   :  { %v620_v36 = vadd.f32 %v614_v35, %v522_v34 }
 0x17c   :  { %v627_v37 = vadd.f32 %v914_v21, %v620_v36 }
 0x17e   :  { %v630_v38 = vmax.f32 %v627_v37, 0.0 }
 0x180   :  { %851 = vst [vmem:[%s1175_s5 + $0xe] sm:$0x3] %v630_v38 }
 0x181   :  { %v616_v39 = vpop.f32.mrf.mxu3 }

</bundles_post_ra>
